<compile_context>
chip_gen: v7x
topology: tpu7x:2x2x1
jax: 0.10.0
libtpu: 0.0.40
codegen_flags: <defaults>
</compile_context>

<pallas_src>
import jax
import jax.numpy as jnp
from jax.experimental import pallas as pl
from jax.experimental.pallas import tpu as pltpu


def _round_up(x, m):
    return ((x + m - 1) // m) * m


def _cdiv(a, b):
    return -(-a // b)


def _vmem_capacity_bytes():
    """Physical per-core VMEM (trace-time query); fallback = v7x (smallest)."""
    try:
        return int(pltpu.get_tpu_info().vmem_capacity_bytes)
    except Exception:
        return 64 * 1024 * 1024


def _is_v5e():
    try:
        kind = jax.devices()[0].device_kind.lower()
        return ("v5 lite" in kind) or ("v5e" in kind) or ("v5litepod" in kind)
    except Exception:
        return False


def _plan_blocks(N, C, HW, itemsize):
    """Pick (batch_block, spatial_tile, vmem_limit_bytes), padding-aware."""
    sublane = 8 * max(4 // itemsize, 1)          # 8 f32 / 16 bf16 / 32 int8
    c_pad = _round_up(C, sublane)

    capacity = _vmem_capacity_bytes()
    # ~1-4 MiB blocks already reach ~85% of HBM roofline; stay well inside the
    # smallest part (v7x: 64 MiB physical, 32 MiB scoped default).
    per_buf_target = max(512 * 1024, min(4 * 1024 * 1024, capacity // 24))

    def _block_bytes(bb, t):
        return bb * c_pad * _round_up(t, 128) * itemsize

    image_bytes = _block_bytes(1, HW)
    if image_bytes <= per_buf_target:
        # Whole image fits in one block; fold several images per grid step so
        # per-step overhead stops dominating tiny feature maps.
        tile_hw = HW
        b_blk = max(1, min(N, per_buf_target // max(image_bytes, 1)))
    else:
        b_blk = 1
        tile_hw = (per_buf_target // (c_pad * itemsize)) // 128 * 128
        tile_hw = max(128, min(tile_hw, HW))

    # v7x has 2 TensorCores: guarantee >= 2 blocks on a parallel axis when
    # there is enough work to matter (no-op for tiny tensors / v5e / v6e).
    if _cdiv(N, b_blk) * _cdiv(HW, tile_hw) == 1 and \
            _block_bytes(b_blk, tile_hw) > 1 * 1024 * 1024:
        if HW >= 256:
            tile_hw = _round_up(_cdiv(HW, 2), 128)
        elif b_blk > 1:
            b_blk = _cdiv(b_blk, 2)

    block_bytes = _block_bytes(b_blk, tile_hw)
    w_bytes = c_pad * 128 * 4                    # resident (1, C, 1) weight tile
    # x1, x2, out double-buffered + weight + headroom; explicit limit so the
    # plan holds on every generation's scoped default.
    vmem_limit = 6 * block_bytes + 2 * w_bytes + 2 * 1024 * 1024
    vmem_limit = min(max(vmem_limit, 16 * 1024 * 1024), 32 * 1024 * 1024)
    return b_blk, tile_hw, vmem_limit


def _make_sa_kernel(low_precision_mul):
    def _sa_kernel(x1_ref, x2_ref, w_ref, b_ref, o_ref):
        # x1_ref, x2_ref, o_ref: (B_blk, C, T) blocks (C on sublanes, pixels on lanes)
        # w_ref: (1, C, 1) resident VMEM; b_ref: (1,) SMEM scalar.
        x2 = x2_ref[...].astype(jnp.float32)
        w = w_ref[...].astype(jnp.float32)
        # 1x1 conv == per-pixel channel reduction (+ bias): sublane reduce over C.
        gate = jnp.sum(x2 * w, axis=1, keepdims=True) + b_ref[0]   # (B_blk, 1, T)
        att = jax.nn.sigmoid(gate)                                  # f32 gate always
        if low_precision_mul:
            # bf16 on v6e/v7x: keep the dominant x1 multiply + store in bf16.
            o_ref[...] = x1_ref[...] * att.astype(o_ref.dtype)
        else:
            o_ref[...] = (x1_ref[...].astype(jnp.float32) * att).astype(o_ref.dtype)
    return _sa_kernel


@jax.jit
def sa_forward(x1, x2, conv_w, conv_b):
    """x1, x2: NCHW.  conv_w: (1, C, 1, 1).  conv_b: (1,).  Returns NCHW."""
    N, C, H, W = x1.shape
    assert x2.shape == (N, C, H, W)
    HW = H * W
    itemsize = jnp.dtype(x1.dtype).itemsize

    # NCHW -> (N, C, H*W): pure reshape, no data movement.
    x1v = x1.reshape(N, C, HW)
    x2v = x2.reshape(N, C, HW)
    w = conv_w.reshape(1, C, 1)                      # C on sublanes, lane-broadcast
    b = conv_b.reshape(1).astype(jnp.float32)        # scalar in SMEM

    b_blk, tile_hw, vmem_limit = _plan_blocks(N, C, HW, itemsize)
    grid = (_cdiv(N, b_blk), _cdiv(HW, tile_hw))

    # bf16 fast path only where the VPU has bf16 lanes (v6e/v7x).
    low_precision_mul = (x1.dtype == jnp.bfloat16) and (not _is_v5e())

    out = pl.pallas_call(
        _make_sa_kernel(low_precision_mul),
        out_shape=jax.ShapeDtypeStruct((N, C, HW), x1.dtype),
        grid_spec=pltpu.PrefetchScalarGridSpec(
            num_scalar_prefetch=0,
            grid=grid,
            in_specs=[
                pl.BlockSpec((b_blk, C, tile_hw), lambda n, i: (n, 0, i)),   # x1
                pl.BlockSpec((b_blk, C, tile_hw), lambda n, i: (n, 0, i)),   # x2
                pl.BlockSpec((1, C, 1), lambda n, i: (0, 0, 0)),             # weight (resident)
                pl.BlockSpec(memory_space=pltpu.MemorySpace.SMEM),           # bias (scalar)
            ],
            out_specs=pl.BlockSpec((b_blk, C, tile_hw), lambda n, i: (n, 0, i)),
        ),
        compiler_params=pltpu.CompilerParams(
            dimension_semantics=("parallel", "parallel"),
            vmem_limit_bytes=vmem_limit,
        ),
    )(x1v, x2v, w, b)

    # (N, C, H*W) -> NCHW: free reshape.
    return out.reshape(N, C, H, W)


if __name__ == "__main__":
    key = jax.random.PRNGKey(0)
    k1, k2, k3, k4 = jax.random.split(key, 4)

    # Small shapes consistent with the module: batch=2, channels=4, spatial=16.
    N, C, H, W = 2, 4, 16, 16
    x1 = jax.random.normal(k1, (N, C, H, W), dtype=jnp.float32)
    x2 = jax.random.normal(k2, (N, C, H, W), dtype=jnp.float32)

    # Synthetic params for Conv2d(C, 1, 1): weight (1, C, 1, 1), bias (1,)
    conv_w = 0.1 * jax.random.normal(k3, (1, C, 1, 1), dtype=jnp.float32)
    conv_b = 0.1 * jax.random.normal(k4, (1,), dtype=jnp.float32)

    out = jax.block_until_ready(sa_forward(x1, x2, conv_w, conv_b))

    # Reference check (plain JAX) of the same semantics.
    gate = jnp.einsum("nchw,c->nhw", x2, conv_w.reshape(C)) + conv_b[0]
    ref = x1 * jax.nn.sigmoid(gate)[:, None, :, :]
    assert out.shape == (N, C, H, W)
    assert jnp.allclose(out, ref, atol=1e-5, rtol=1e-5)

    print("KERNEL_OK")
</pallas_src>

<mosaic_0001>
module attributes {stable_mosaic.version = 11 : i64} {
  func.func @_sa_kernel(%arg0: i32, %arg1: i32, %arg2: memref<2x4x256xf32, #tpu.memory_space<vmem>>, %arg3: memref<2x4x256xf32, #tpu.memory_space<vmem>>, %arg4: memref<1x4x1xf32, #tpu.memory_space<vmem>>, %arg5: memref<1xf32, #tpu.memory_space<smem>>, %arg6: memref<2x4x256xf32, #tpu.memory_space<vmem>>) attributes {dimension_semantics = [#tpu.dimension_semantics<parallel>, #tpu.dimension_semantics<parallel>], iteration_bounds = array<i64: 1, 1>, scalar_prefetch = 0 : i64, scratch_operands = 0 : i64, tpu.core_type = #tpu.core_type<tc>, window_params = [{transform_indices = @transform_0, window_bounds = array<i64: 2, 4, 256>}, {transform_indices = @transform_1, window_bounds = array<i64: 2, 4, 256>}, {pipeline_mode = #tpu.pipeline_mode<synchronous>, transform_indices = @transform_2, window_bounds = array<i64: 1, 4, 1>}, {transform_indices = @transform_3, window_bounds = array<i64: 1>}, {transform_indices = @transform_4, window_bounds = array<i64: 2, 4, 256>}]} {
    %c0 = arith.constant 0 : index
    %c0_0 = arith.constant 0 : index
    %c0_1 = arith.constant 0 : index
    %0 = vector.load %arg3[%c0, %c0_0, %c0_1] : memref<2x4x256xf32, #tpu.memory_space<vmem>>, vector<2x4x256xf32>
    %c0_2 = arith.constant 0 : index
    %c0_3 = arith.constant 0 : index
    %c0_4 = arith.constant 0 : index
    %1 = vector.load %arg4[%c0_2, %c0_3, %c0_4] : memref<1x4x1xf32, #tpu.memory_space<vmem>>, vector<1x4x1xf32>
    %2 = vector.broadcast %1 : vector<1x4x1xf32> to vector<2x4x256xf32>
    %3 = arith.mulf %0, %2 : vector<2x4x256xf32>
    %cst = arith.constant dense<0.000000e+00> : vector<2x256xf32>
    %4 = vector.multi_reduction <add>, %3, %cst [1] : vector<2x4x256xf32> to vector<2x256xf32>
    %5 = vector.shape_cast %4 : vector<2x256xf32> to vector<2x1x256xf32>
    %c0_5 = arith.constant 0 : index
    %6 = memref.load %arg5[%c0_5] : memref<1xf32, #tpu.memory_space<smem>>
    %7 = vector.broadcast %6 : f32 to vector<2x1x256xf32>
    %8 = arith.addf %5, %7 : vector<2x1x256xf32>
    %9 = arith.negf %8 : vector<2x1x256xf32>
    %10 = math.exp %9 : vector<2x1x256xf32>
    %cst_6 = arith.constant 1.000000e+00 : f32
    %11 = vector.broadcast %cst_6 : f32 to vector<2x1x256xf32>
    %12 = arith.addf %11, %10 : vector<2x1x256xf32>
    %13 = arith.divf %11, %12 : vector<2x1x256xf32>
    %c0_7 = arith.constant 0 : index
    %c0_8 = arith.constant 0 : index
    %c0_9 = arith.constant 0 : index
    %14 = vector.load %arg2[%c0_7, %c0_8, %c0_9] : memref<2x4x256xf32, #tpu.memory_space<vmem>>, vector<2x4x256xf32>
    %15 = vector.broadcast %13 : vector<2x1x256xf32> to vector<2x4x256xf32>
    %16 = arith.mulf %14, %15 : vector<2x4x256xf32>
    %c0_10 = arith.constant 0 : index
    %c0_11 = arith.constant 0 : index
    %c0_12 = arith.constant 0 : index
    %17 = vector.load %arg6[%c0_10, %c0_11, %c0_12] : memref<2x4x256xf32, #tpu.memory_space<vmem>>, vector<2x4x256xf32>
    tpu.vector_store %arg6[%c0_10, %c0_11, %c0_12], %16 {strides = array<i32>} : memref<2x4x256xf32, #tpu.memory_space<vmem>>, vector<2x4x256xf32>,
    return
  }
  func.func @transform_0(%arg0: i32, %arg1: i32) -> (i32, i32, i32) {
    %c0_i32 = arith.constant 0 : i32
    %c0_i32_0 = arith.constant 0 : i32
    return %arg0, %c0_i32, %arg1 : i32, i32, i32
  }
  func.func @transform_1(%arg0: i32, %arg1: i32) -> (i32, i32, i32) {
    %c0_i32 = arith.constant 0 : i32
    %c0_i32_0 = arith.constant 0 : i32
    return %arg0, %c0_i32, %arg1 : i32, i32, i32
  }
  func.func @transform_2(%arg0: i32, %arg1: i32) -> (i32, i32, i32) {
    %c0_i32 = arith.constant 0 : i32
    %c0_i32_0 = arith.constant 0 : i32
    %c0_i32_1 = arith.constant 0 : i32
    %c0_i32_2 = arith.constant 0 : i32
    return %c0_i32, %c0_i32_0, %c0_i32_1 : i32, i32, i32
  }
  func.func @transform_3(%arg0: i32, %arg1: i32) -> i32 {
    %c0_i32 = arith.constant 0 : i32
    %c0_i32_0 = arith.constant 0 : i32
    return %c0_i32 : i32
  }
  func.func @transform_4(%arg0: i32, %arg1: i32) -> (i32, i32, i32) {
    %c0_i32 = arith.constant 0 : i32
    %c0_i32_0 = arith.constant 0 : i32
    return %arg0, %c0_i32, %arg1 : i32, i32, i32
  }
}

</mosaic_0001>

<bundles_post_ra>
// kernel: sa_forward.1
= control target key start
LH: loop header
LB: loop body
LE: loop exit
PB: predicated region body
PF: predicated region fallthrough
CT: control target
= control target key end

     0   :  { %v141_v0 = vmov 0   ;;  %v142_v2 = vmov 839922192   ;;  %v28_v4 = vlaneseq  ;;  %vm41_vm0 = vcmask 1043456   ;;  %s192_s2 = inlined_call_operand.vmem [shape: f32[1,4,1], index: 2, kind: input, shape index: {}]   ;;  %s193_s1 = inlined_call_operand.vmem [shape: f32[2,4,256], index: 1, kind: input, shape index: {}]   ;;  %s194_s3 = inlined_call_operand.<no memory space> [shape: f32[1], index: 3, kind: input, shape index: {}]   ;;  %s195_s0 = inlined_call_operand.vmem [shape: f32[2,4,256], index: 0, kind: input, shape index: {}]   ;;  %s196_s4 = inlined_call_operand.vmem [shape: f32[2,4,256], index: 4, kind: output, shape index: {}]  }
   0x1   :  { %124 = vset.pattern.permute.xlu0 %v141_v0  ;;  %v20_v1 = vld [vmem:[%s192_s2] sm:$0xf]  ;;  %v26_v3 = vunpack.c.l.s4 %v142_v2  ;;  %v19_v10 = vld [vmem:[%s193_s1 + $0x8] sm:$0xff]  ;;  %v71_v38 = vstv %s194_s3 }
   0x2   :  { %23 = vperm.xlu0 %124, %v20_v1   ;;  %v29_v6 = vshrl.u32 %v28_v4, 7  ;;  %v18_v9 = vld [vmem:[%s193_s1] sm:$0xff]  ;;  %v101_v2 = vld [vmem:[%s195_s0 + $0x8] sm:$0xff] }
   0x3   :  { %v27_v5 = vunpack.c.0.s8 %v26_v3  ;;  %v100_v0 = vld [vmem:[%s195_s0] sm:$0xff] }
   0x5   :  { %v30_v7 = vsub.s32 %v27_v5, %v29_v6 }
  0x81   :  { %v24_v8 = vpop.permute.xlu0 %23 }
  0x82   :  { %v31_v11 = vrot.slane %v24_v8, %v30_v7 }
  0x84   :  { %v33_v12 = vmul.f32 %v31_v11, %v18_v9  ;;  %v34_v13 = vmul.f32 %v31_v11, %v19_v10 }
  0x86   :  { %v37_v14 = vcombine.high %v33_v12, %v33_v12  ;;  %v38_v15 = vcombine.high %v34_v13, %v34_v13  ;;  %v42_v16 = vsel %vm41_vm0, %v33_v12, 0.0  ;;  %v56_v17 = vsel %vm41_vm0, %v34_v13, 0.0 }
  0x87   :  { %v43_v18 = vrot.slane %v42_v16, 4  ;;  %v57_v19 = vrot.slane %v56_v17, 4 }
  0x88   :  { %v49_v20 = vsel %vm41_vm0, %v37_v14, 0.0  ;;  %v63_v21 = vsel %vm41_vm0, %v38_v15, 0.0 }
  0x89   :  { %v44_v22 = vadd.f32 %v43_v18, %v42_v16  ;;  %v50_v23 = vrot.slane %v49_v20, 4  ;;  %v58_v24 = vadd.f32 %v57_v19, %v56_v17  ;;  %v64_v25 = vrot.slane %v63_v21, 4 }
  0x8b   :  { %v45_v26 = vrot.slane %v44_v22, 2  ;;  %v51_v27 = vadd.f32 %v50_v23, %v49_v20  ;;  %v59_v28 = vrot.slane %v58_v24, 2  ;;  %v65_v29 = vadd.f32 %v64_v25, %v63_v21 }
  0x8d   :  { %v46_v30 = vadd.f32 %v45_v26, %v44_v22  ;;  %v52_v31 = vrot.slane %v51_v27, 2  ;;  %v60_v32 = vadd.f32 %v59_v28, %v58_v24  ;;  %v66_v33 = vrot.slane %v65_v29, 2 }
  0x8f   :  { %v47_v34 = vrot.slane %v46_v30, 1  ;;  %v53_v35 = vadd.f32 %v52_v31, %v51_v27  ;;  %v61_v36 = vrot.slane %v60_v32, 1  ;;  %v67_v37 = vadd.f32 %v66_v33, %v65_v29 }
  0x91   :  { %v48_v39 = vadd.f32 %v47_v34, %v46_v30  ;;  %v54_v40 = vrot.slane %v53_v35, 1  ;;  %v62_v41 = vadd.f32 %v61_v36, %v60_v32  ;;  %v68_v42 = vrot.slane %v67_v37, 1 }
  0x93   :  { %v55_v43 = vadd.f32 %v54_v40, %v53_v35  ;;  %v69_v44 = vadd.f32 %v68_v42, %v67_v37  ;;  %v72_v45 = vadd.f32 %v71_v38, %v48_v39  ;;  %v74_v46 = vadd.f32 %v71_v38, %v62_v41 }
  0x95   :  { %v73_v47 = vadd.f32 %v71_v38, %v55_v43  ;;  %v75_v48 = vadd.f32 %v71_v38, %v69_v44  ;;  %v118_v49 = vmul.f32 -1.442695, %v72_v45  ;;  %v120_v50 = vmul.f32 -1.442695, %v74_v46 }
  0x97   :  { %125 = vpow2.f32 %v118_v49  ;;  %v119_v51 = vmul.f32 -1.442695, %v73_v47  ;;  %v121_v52 = vmul.f32 -1.442695, %v75_v48 }
  0x98   :  { %127 = vpow2.f32 %v120_v50 }
  0x99   :  { %129 = vpow2.f32 %v119_v51 }
  0x9a   :  { %131 = vpow2.f32 %v121_v52 }
  0xa1   :  { %v126_v53 = vpop.eup %125 }
  0xa2   :  { %v128_v54 = vpop.eup %127  ;;  %v88_v55 = vadd.f32 1.0, %v126_v53 }
  0xa3   :  { %v130_v56 = vpop.eup %129  ;;  %v90_v57 = vadd.f32 1.0, %v128_v54 }
  0xa4   :  { %v132_v58 = vpop.eup %131  ;;  %v89_v59 = vadd.f32 1.0, %v130_v56  ;;  %133 = vrcp.f32 %v88_v55 }
  0xa5   :  { %v91_v60 = vadd.f32 1.0, %v132_v58  ;;  %135 = vrcp.f32 %v90_v57 }
  0xa6   :  { %137 = vrcp.f32 %v89_v59 }
  0xa7   :  { %139 = vrcp.f32 %v91_v60 }
  0xae   :  { %v134_v61 = vpop.eup %133 }
  0xaf   :  { %v136_v62 = vpop.eup %135 }
  0xb0   :  { %v138_v63 = vpop.eup %137 }
  0xb1   :  { %v140_v1 = vpop.eup %139  ;;  %v106_v3 = vcombine.low %v134_v61, %v138_v63 }
  0xb2   :  { %v107_v4 = vcombine.low %v136_v62, %v140_v1 }
  0xb3   :  { %v110_v5 = vmul.f32 %v106_v3, %v100_v0 }
  0xb4   :  { %v111_v6 = vmul.f32 %v107_v4, %v101_v2 }
  0xb5   :  { %112 = vst [vmem:[%s196_s4] sm:$0xff] %v110_v5 }
  0xb6   :  { %113 = vst [vmem:[%s196_s4 + $0x8] sm:$0xff] %v111_v6 }

</bundles_post_ra>
